<compile_context>
chip_gen: v6e
topology: v6e:2x2x1
jax: 0.10.0
libtpu: 0.0.40
codegen_flags: <defaults>
</compile_context>

<pallas_src>
import jax
import jax.numpy as jnp
from jax.experimental import pallas as pl
from jax.experimental.pallas import tpu as pltpu


def _swish_kernel(x_ref, o_ref):
    # f32 internal math (free: EUP/VPU have slack in a mem-bound kernel);
    # jax.nn.sigmoid is the stable formulation (no exp overflow -> NaN).
    x = x_ref[...].astype(jnp.float32)
    o_ref[...] = (x * jax.nn.sigmoid(x)).astype(o_ref.dtype)


_LANE = 128


def _sublane_multiple(dtype) -> int:
    itemsize = jnp.dtype(dtype).itemsize
    if itemsize >= 4:
        return 8
    if itemsize == 2:
        return 16
    return 32


def _chip_config():
    """Return (target_block_bytes, tensorcores_per_chip), generation-aware.

    Falls back to conservative values (2 MiB blocks, 1 TC) if the device kind
    cannot be determined, which fits every generation's default scoped VMEM.
    """
    kind = ""
    try:
        kind = str(getattr(jax.devices()[0], "device_kind", "")).lower()
    except Exception:
        pass
    if "v7" in kind:
        # ~3.2 TB/s per TC: bigger blocks amortize the ~0.35 us per-step cost.
        return 6 << 20, 2
    if "v6" in kind:
        return 4 << 20, 1
    # v5e (16 MiB default scoped VMEM) and anything unrecognized: stay small.
    return 2 << 20, 1


def _vmem_limit(block_bytes: int) -> int:
    # in + out, double-buffered = 4x block bytes; generous headroom while staying
    # well under the smallest physical VMEM (64 MiB per TC on v7x).
    return int(min(44 << 20, max(32 << 20, 5 * block_bytes)))


def swish(x: jax.Array) -> jax.Array:
    """Elementwise swish; matches torch.sigmoid(x) * x for any shape."""
    orig_shape = x.shape
    dtype = x.dtype
    n = x.size
    if n == 0:
        return x

    itemsize = jnp.dtype(dtype).itemsize
    sub = _sublane_multiple(dtype)
    target_bytes, num_tc = _chip_config()
    min_blocks = 2 * num_tc  # >= 2 grid steps per TensorCore on dual-TC chips

    cost = pl.CostEstimate(
        flops=2 * n, transcendentals=n, bytes_accessed=2 * n * itemsize
    )

    x_flat = x.reshape(-1)  # contiguous reshape: no copy

    if n % _LANE == 0:
        # ---------- aligned fast path: zero-copy lane-dense 2D slab ----------
        lane = _LANE
        for cand in (4096, 2048, 1024, 512, 256, 128):
            if n % cand == 0:
                lane = cand
                break
        rows = n // lane

        if rows <= sub:
            block_rows = rows
        else:
            rows_target = max(sub, target_bytes // (lane * itemsize))
            block_rows = max(sub, (min(rows_target, rows) // sub) * sub)
            if num_tc > 1 and rows >= 2 * min_blocks * sub:
                # Cap the block so the dual-TC chip gets >= min_blocks steps.
                cap = max(sub, (rows // min_blocks // sub) * sub)
                block_rows = min(block_rows, cap)
                # Prefer an even number of steps (balanced across the 2 TCs).
                nb = pl.cdiv(rows, block_rows)
                if nb > 1 and nb % 2 == 1:
                    cand_rows = max(sub, sub * pl.cdiv(pl.cdiv(rows, nb + 1), sub))
                    if pl.cdiv(rows, cand_rows) % 2 == 0:
                        block_rows = cand_rows

        grid = (pl.cdiv(rows, block_rows),)
        block_bytes = block_rows * lane * itemsize
        out2d = pl.pallas_call(
            _swish_kernel,
            out_shape=jax.ShapeDtypeStruct((rows, lane), dtype),
            grid_spec=pltpu.PrefetchScalarGridSpec(
                num_scalar_prefetch=0,
                grid=grid,
                in_specs=[pl.BlockSpec((block_rows, lane), lambda i: (i, 0))],
                out_specs=pl.BlockSpec((block_rows, lane), lambda i: (i, 0)),
            ),
            compiler_params=pltpu.CompilerParams(
                dimension_semantics=("parallel",),
                vmem_limit_bytes=_vmem_limit(block_bytes),
            ),
            cost_estimate=cost,
        )(x_flat.reshape(rows, lane))
        return out2d.reshape(orig_shape)  # contiguous reshape: no copy

    # ---------- unaligned path: flat 1D, Pallas masks the partial tail ----------
    vreg_elems = sub * _LANE  # one fully-packed vreg worth of elements
    if n <= vreg_elems:
        block_elems = n  # block equals full array dim: always legal
    else:
        target_elems = max(vreg_elems, target_bytes // itemsize)
        block_elems = max(
            vreg_elems, (min(target_elems, n) // vreg_elems) * vreg_elems
        )
        if num_tc > 1 and n >= 2 * min_blocks * vreg_elems:
            cap = max(vreg_elems, (n // min_blocks // vreg_elems) * vreg_elems)
            block_elems = min(block_elems, cap)

    grid = (pl.cdiv(n, block_elems),)
    block_bytes = block_elems * itemsize
    out_flat = pl.pallas_call(
        _swish_kernel,
        out_shape=jax.ShapeDtypeStruct((n,), dtype),
        grid_spec=pltpu.PrefetchScalarGridSpec(
            num_scalar_prefetch=0,
            grid=grid,
            in_specs=[pl.BlockSpec((block_elems,), lambda i: (i,))],
            out_specs=pl.BlockSpec((block_elems,), lambda i: (i,)),
        ),
        compiler_params=pltpu.CompilerParams(
            dimension_semantics=("parallel",),
            vmem_limit_bytes=_vmem_limit(block_bytes),
        ),
        cost_estimate=cost,
    )(x_flat)
    return out_flat.reshape(orig_shape)


if __name__ == "__main__":
    key = jax.random.PRNGKey(0)

    def _ref(v):
        return jax.nn.sigmoid(v) * v

    # 1) Small NCHW-like input consistent with the module's forward.
    x = jax.random.normal(key, (2, 4, 16, 16), dtype=jnp.float32)
    y = swish(x)
    jax.block_until_ready(y)
    assert y.shape == x.shape and y.dtype == x.dtype
    assert jnp.allclose(y, _ref(x), atol=1e-6, rtol=1e-6)

    # 2) Non-128-aligned element count exercises the zero-copy unaligned path.
    k2 = jax.random.fold_in(key, 1)
    x2 = jax.random.normal(k2, (3, 5, 7), dtype=jnp.float32)
    y2 = swish(x2)
    jax.block_until_ready(y2)
    assert jnp.allclose(y2, _ref(x2), atol=1e-6, rtol=1e-6)

    # 3) Larger input exercises the multi-block pipelined grid path.
    k3 = jax.random.fold_in(key, 2)
    x3 = jax.random.normal(k3, (4, 64, 64, 64), dtype=jnp.float32)
    y3 = swish(x3)
    jax.block_until_ready(y3)
    assert jnp.allclose(y3, _ref(x3), atol=1e-6, rtol=1e-6)

    print("KERNEL_OK")
</pallas_src>

<mosaic_0001>
module attributes {stable_mosaic.version = 11 : i64} {
  func.func @_swish_kernel(%arg0: i32, %arg1: memref<1x2048xf32, #tpu.memory_space<vmem>>, %arg2: memref<1x2048xf32, #tpu.memory_space<vmem>>) attributes {dimension_semantics = [#tpu.dimension_semantics<parallel>], iteration_bounds = array<i64: 1>, scalar_prefetch = 0 : i64, scratch_operands = 0 : i64, tpu.core_type = #tpu.core_type<tc>, window_params = [{transform_indices = @transform_0, window_bounds = array<i64: 1, 2048>}, {transform_indices = @transform_1, window_bounds = array<i64: 1, 2048>}]} {
    %c0 = arith.constant 0 : index
    %c0_0 = arith.constant 0 : index
    %0 = vector.load %arg1[%c0, %c0_0] : memref<1x2048xf32, #tpu.memory_space<vmem>>, vector<1x2048xf32>
    %1 = arith.negf %0 : vector<1x2048xf32>
    %2 = math.exp %1 : vector<1x2048xf32>
    %cst = arith.constant 1.000000e+00 : f32
    %3 = vector.broadcast %cst : f32 to vector<1x2048xf32>
    %4 = arith.addf %3, %2 : vector<1x2048xf32>
    %5 = arith.divf %3, %4 : vector<1x2048xf32>
    %6 = arith.mulf %0, %5 : vector<1x2048xf32>
    %c0_1 = arith.constant 0 : index
    %c0_2 = arith.constant 0 : index
    %7 = vector.load %arg2[%c0_1, %c0_2] : memref<1x2048xf32, #tpu.memory_space<vmem>>, vector<1x2048xf32>
    tpu.vector_store %arg2[%c0_1, %c0_2], %6 {strides = array<i32>} : memref<1x2048xf32, #tpu.memory_space<vmem>>, vector<1x2048xf32>,
    return
  }
  func.func @transform_0(%arg0: i32) -> (i32, i32) {
    %c0_i32 = arith.constant 0 : i32
    %c0_i32_0 = arith.constant 0 : i32
    return %arg0, %c0_i32 : i32, i32
  }
  func.func @transform_1(%arg0: i32) -> (i32, i32) {
    %c0_i32 = arith.constant 0 : i32
    %c0_i32_0 = arith.constant 0 : i32
    return %arg0, %c0_i32 : i32, i32
  }
}

</mosaic_0001>

<bundles_post_ra>
// kernel: tpu_custom_call.1
= control target key start
LH: loop header
LB: loop body
LE: loop exit
PB: predicated region body
PF: predicated region fallthrough
CT: control target
= control target key end

     0   :  { %6 = vsyncpa [#allocation3], 0  ;;  %s128_s0 = inlined_call_operand.hbm [shape: f32[1,2048], index: 0, kind: input, shape index: {}]   ;;  %s129_s1 = inlined_call_operand.hbm [shape: f32[1,2048], index: 1, kind: output, shape index: {}]  }
   0x1   :  { %7 = vsyncpa [#allocation4], 0  ;;  %s110_s6 = smov [#allocation2]  }
   0x2   :  { %s14_s7 = sshll.u32 %s110_s6, 4  ;;  %s15_s7 = int_to_ptr.vmem [resolvable:$true] %s14_s7 }
   0x3   :  { %s74_s8 = scalar_lea.vmem %s15_s7, 256  ;;  %p79_p1 = scmp.lt.s32.totalorder %s15_s7, %s15_s7 }
   0x4   :  { %p75_p0 = scmp.ne.s32.totalorder %s15_s7, %s74_s8  ;;  %p80_p2 = scmp.lt.s32.totalorder %s74_s8, %s74_s8 }
   0x6   :  { %p81_p3 = por %p80_p2, %p79_p1 }
   0x8   :  { %p82_p4 = pnand %p81_p3, %p75_p0 }
   0xa   :  { %85 = shalt.err (!%p82_p4)
}
   0xb   :  { %17 = dma.hbm_to_vmem [thread:$0]  %s128_s0, 256, %s15_s7, [#allocation3]  }
   0xc   :  { %106 = dma.done.wait [#allocation3], 256  }
   0xd   :  { %107 = vsyncadd [#allocation3], 4294967040  ;;  %v21_v0 = vld [vmem:[#allocation2] sm:$0xff]  ;;  %v22_v1 = vld [vmem:[#allocation2 + $0x8] sm:$0xff]  ;;  %s111_s11 = smov [#allocation5]  }
   0xe   :  { %v54_v2 = vmul.f32 -1.442695, %v21_v0  ;;  %v55_v3 = vmul.f32 -1.442695, %v22_v1  ;;  %s45_s12 = sshll.u32 %s111_s11, 4  ;;  %s46_s12 = int_to_ptr.vmem [resolvable:$true] %s45_s12 }
   0xf   :  { %s86_s0 = scalar_lea.vmem %s46_s12, 256  ;;  %p91_p6 = scmp.lt.s32.totalorder %s46_s12, %s46_s12 }
  0x10   :  { %58 = vpow2.f32 %v54_v2  ;;  %p87_p5 = scmp.ne.s32.totalorder %s46_s12, %s86_s0  ;;  %p92_p7 = scmp.lt.s32.totalorder %s86_s0, %s86_s0 }
  0x11   :  { %60 = vpow2.f32 %v55_v3 }
  0x12   :  { %p93_p8 = por %p92_p7, %p91_p6 }
  0x14   :  { %p94_p9 = pnand %p93_p8, %p87_p5 }
  0x1d   :  { %v59_v4 = vpop.eup %58 }
  0x1e   :  { %v61_v5 = vpop.eup %60  ;;  %v29_v6 = vadd.f32 1.0, %v59_v4 }
  0x1f   :  { %v30_v7 = vadd.f32 1.0, %v61_v5 }
  0x20   :  { %62 = vrcp.f32 %v29_v6 }
  0x21   :  { %64 = vrcp.f32 %v30_v7 }
  0x2d   :  { %v63_v8 = vpop.eup %62 }
  0x2e   :  { %v65_v9 = vpop.eup %64  ;;  %v35_v10 = vmul.f32 %v63_v8, %v21_v0 }
  0x2f   :  { %v36_v11 = vmul.f32 %v65_v9, %v22_v1 }
  0x30   :  { %37 = vst [vmem:[#allocation5] sm:$0xff] %v35_v10 }
  0x31   :  { %38 = vst [vmem:[#allocation5 + $0x8] sm:$0xff] %v36_v11 }
  0x32   :  { %97 = shalt.err (!%p94_p9)
}
  0x33   :  { %48 = dma.vmem_to_hbm [thread:$0]  %s46_s12, 256, %s129_s1, [#allocation4]  }
  0x34   :  { %108 = dma.done.wait [#allocation4], 256  }
  0x35   :  { %109 = vsyncadd [#allocation4], 4294967040 }
  0x36   :  { %52 = vsyncpa [#allocation3], 1 }
  0x37   :  { %53 = vsyncpa [#allocation4], 1 }

</bundles_post_ra>
